<compile_context>
chip_gen: v5e
topology: v5e:2x2
jax: 0.10.0
libtpu: 0.0.40
codegen_flags: <defaults>
</compile_context>

<pallas_src>
import jax
import jax.numpy as jnp
from jax.experimental import pallas as pl
from jax.experimental.pallas import tpu as pltpu

B = 2
N_FEATURES = 64
N_CLASSES = 10
K = 32                       # Conv1d kernel size
LANE = 128                   # vreg lane width
NEG_BIG = -1e30              # masks padded class lanes out of the softmax


def simple_model_kernel(xp_ref, w_ref, b_ref, out_ref):
    # xp_ref : (bm, 128) VMEM -- zero-padded input rows ('same'-padded signal in cols [0, N+K-1))
    # w_ref  : (128, 128) VMEM -- conv-folded effective weight (zero outside [0,N+K-1) x [0,C))
    # b_ref  : (1, 128)  VMEM -- effective bias; -1e30 in padded class lanes
    # out_ref: (bm, 128) VMEM -- log-probabilities (real classes in cols [0, C))
    logits = (jnp.dot(xp_ref[...], w_ref[...],
                      preferred_element_type=jnp.float32) + b_ref[...])
    # LogSoftmax(dim=1); padded lanes carry -1e30 so exp() contributes 0.
    m = jnp.max(logits, axis=1, keepdims=True)
    s = logits - m
    lse = jnp.log(jnp.sum(jnp.exp(s), axis=1, keepdims=True))
    out_ref[...] = s - lse


def simple_model_forward(x, conv_w, conv_b, lin_w, lin_b, block_b=128):
    # x: (B, 1, N) NCL like PyTorch; conv_w: (2, 1, K); conv_b: (2,)
    # lin_w: (C, 2N) (PyTorch Linear layout); lin_b: (C,)
    batch = x.shape[0]
    n = x.shape[2]
    k = conv_w.shape[2]
    c_out = lin_w.shape[0]
    pad_l = (k - 1) // 2                               # PyTorch 'same': left = total//2
    p_len = n + k - 1                                  # padded-signal length
    assert p_len <= LANE and c_out <= LANE, "single-tile design assumes N+K-1, C <= 128"

    # ---- wrapper-side affine folding: logits = xp @ W_eff + b_eff ---------
    # y[b,c,t] = sum_k cw[c,k] * xp[b,t+k] + cb[c]  (channel-major flatten)
    # => W_eff[p, j] = sum_{c,k} cw[c,k] * lw_half_c[p-k, j]
    #    b_eff[j]    = lin_b[j] + sum_c cb[c] * sum_t lw_half_c[t, j]
    cw = conv_w[:, 0, :].astype(jnp.float32)           # (2, K)
    lw_t = lin_w.T.astype(jnp.float32)                 # (2N, C)
    halves = (lw_t[:n, :], lw_t[n:, :])                # per conv channel: (N, C)
    w_eff = jnp.zeros((p_len, c_out), jnp.float32)
    for c in range(2):
        for kk in range(k):
            w_eff = w_eff.at[kk:kk + n, :].add(cw[c, kk] * halves[c])
    b_eff = (lin_b.astype(jnp.float32)
             + conv_b[0] * halves[0].sum(axis=0)
             + conv_b[1] * halves[1].sum(axis=0))      # (C,)

    # ---- pad operands to lane-dense 128-wide tiles -------------------------
    bm = min(block_b, batch)                           # batch tile (full B if small)
    n_blocks = pl.cdiv(batch, bm)
    bp = n_blocks * bm

    xs = x[:, 0, :].astype(jnp.float32)                # (B, N)
    xp = jnp.zeros((bp, LANE), jnp.float32).at[:batch, pad_l:pad_l + n].set(xs)
    w_pad = jnp.zeros((LANE, LANE), jnp.float32).at[:p_len, :c_out].set(w_eff)
    b_pad = jnp.full((1, LANE), NEG_BIG, jnp.float32).at[0, :c_out].set(b_eff)

    out = pl.pallas_call(
        simple_model_kernel,
        out_shape=jax.ShapeDtypeStruct((bp, LANE), jnp.float32),
        grid=(n_blocks,),
        in_specs=[
            pl.BlockSpec((bm, LANE), lambda i: (i, 0)),     # batch-tiled input
            pl.BlockSpec((LANE, LANE), lambda i: (0, 0)),   # folded weight (resident)
            pl.BlockSpec((1, LANE), lambda i: (0, 0)),      # folded bias (resident)
        ],
        out_specs=pl.BlockSpec((bm, LANE), lambda i: (i, 0)),
        compiler_params=pltpu.CompilerParams(
            dimension_semantics=("parallel",)),             # shard batch across TCs (v7x)
    )(xp, w_pad, b_pad)
    return out[:batch, :c_out]


def reference_forward(x, conv_w, conv_b, lin_w, lin_b):
    # Pure-JAX reference matching PyTorch semantics (conv -> flatten -> linear -> log_softmax).
    batch = x.shape[0]
    n = x.shape[2]
    k = conv_w.shape[2]
    pad_l = (k - 1) // 2
    pad_r = (k - 1) - pad_l
    xs = x[:, 0, :]
    xp = jnp.pad(xs, ((0, 0), (pad_l, pad_r)))
    y = jnp.stack(
        [sum(conv_w[c, 0, kk] * xp[:, kk:kk + n] for kk in range(k)) + conv_b[c]
         for c in range(2)], axis=1)                    # (B, 2, N)
    flat = y.reshape(batch, -1)                         # channel-major flatten
    logits = flat @ lin_w.T + lin_b
    return jax.nn.log_softmax(logits, axis=1)


if __name__ == "__main__":
    key = jax.random.PRNGKey(0)
    k_x, k_cw, k_cb, k_lw, k_lb = jax.random.split(key, 5)

    # Deterministic parameter init (PyTorch-style uniform bounds).
    conv_fan_in = 1 * K
    conv_bound = 1.0 / (conv_fan_in ** 0.5)
    conv_w = jax.random.uniform(k_cw, (2, 1, K), jnp.float32, -conv_bound, conv_bound)
    conv_b = jax.random.uniform(k_cb, (2,), jnp.float32, -conv_bound, conv_bound)

    lin_fan_in = 2 * N_FEATURES
    lin_bound = 1.0 / (lin_fan_in ** 0.5)
    lin_w = jax.random.uniform(k_lw, (N_CLASSES, lin_fan_in), jnp.float32, -lin_bound, lin_bound)
    lin_b = jax.random.uniform(k_lb, (N_CLASSES,), jnp.float32, -lin_bound, lin_bound)

    x = jax.random.normal(k_x, (B, 1, N_FEATURES), jnp.float32)

    out = simple_model_forward(x, conv_w, conv_b, lin_w, lin_b)
    out = jax.block_until_ready(out)

    ref = reference_forward(x, conv_w, conv_b, lin_w, lin_b)
    assert out.shape == (B, N_CLASSES)
    assert jnp.allclose(out, ref, atol=1e-4, rtol=1e-4), "mismatch vs pure-JAX reference"

    print("KERNEL_OK")
</pallas_src>

<mosaic_0001>
module attributes {stable_mosaic.version = 11 : i64} {
  func.func @simple_model_kernel(%arg0: i32, %arg1: memref<2x128xf32, #tpu.memory_space<vmem>>, %arg2: memref<128x128xf32, #tpu.memory_space<vmem>>, %arg3: memref<1x128xf32, #tpu.memory_space<vmem>>, %arg4: memref<2x128xf32, #tpu.memory_space<vmem>>) attributes {dimension_semantics = [#tpu.dimension_semantics<parallel>], iteration_bounds = array<i64: 1>, scalar_prefetch = 0 : i64, scratch_operands = 0 : i64, tpu.core_type = #tpu.core_type<tc>, window_params = [{transform_indices = @transform_0, window_bounds = array<i64: 2, 128>}, {pipeline_mode = #tpu.pipeline_mode<synchronous>, transform_indices = @transform_1, window_bounds = array<i64: 128, 128>}, {pipeline_mode = #tpu.pipeline_mode<synchronous>, transform_indices = @transform_2, window_bounds = array<i64: 1, 128>}, {transform_indices = @transform_3, window_bounds = array<i64: 2, 128>}]} {
    %c0 = arith.constant 0 : index
    %c0_0 = arith.constant 0 : index
    %0 = vector.load %arg1[%c0, %c0_0] : memref<2x128xf32, #tpu.memory_space<vmem>>, vector<2x128xf32>
    %c0_1 = arith.constant 0 : index
    %c0_2 = arith.constant 0 : index
    %1 = vector.load %arg2[%c0_1, %c0_2] : memref<128x128xf32, #tpu.memory_space<vmem>>, vector<128x128xf32>
    %cst = arith.constant dense<0.000000e+00> : vector<2x128xf32>
    %2 = tpu.matmul %0, %1, %cst {dimension_numbers = #tpu.dot_dimension_numbers<[1], [0], [0], [1], [0, 0, 1, 1], [], []>} : vector<2x128xf32>, vector<128x128xf32>, vector<2x128xf32> -> vector<2x128xf32>
    %c0_3 = arith.constant 0 : index
    %c0_4 = arith.constant 0 : index
    %3 = vector.load %arg3[%c0_3, %c0_4] : memref<1x128xf32, #tpu.memory_space<vmem>>, vector<1x128xf32>
    %4 = vector.broadcast %3 : vector<1x128xf32> to vector<2x128xf32>
    %5 = arith.addf %2, %4 : vector<2x128xf32>
    %cst_5 = arith.constant dense<0xFF800000> : vector<2xf32>
    %6 = vector.multi_reduction <maximumf>, %5, %cst_5 [1] : vector<2x128xf32> to vector<2xf32>
    %7 = vector.shape_cast %6 : vector<2xf32> to vector<2x1xf32>
    %8 = vector.broadcast %7 : vector<2x1xf32> to vector<2x128xf32>
    %9 = arith.subf %5, %8 : vector<2x128xf32>
    %10 = math.exp %9 : vector<2x128xf32>
    %cst_6 = arith.constant dense<0.000000e+00> : vector<2xf32>
    %11 = vector.multi_reduction <add>, %10, %cst_6 [1] : vector<2x128xf32> to vector<2xf32>
    %12 = vector.shape_cast %11 : vector<2xf32> to vector<2x1xf32>
    %13 = math.log %12 : vector<2x1xf32>
    %14 = vector.broadcast %13 : vector<2x1xf32> to vector<2x128xf32>
    %15 = arith.subf %9, %14 : vector<2x128xf32>
    %c0_7 = arith.constant 0 : index
    %c0_8 = arith.constant 0 : index
    %16 = vector.load %arg4[%c0_7, %c0_8] : memref<2x128xf32, #tpu.memory_space<vmem>>, vector<2x128xf32>
    tpu.vector_store %arg4[%c0_7, %c0_8], %15 {strides = array<i32>} : memref<2x128xf32, #tpu.memory_space<vmem>>, vector<2x128xf32>,
    return
  }
  func.func @transform_0(%arg0: i32) -> (i32, i32) {
    %c0_i32 = arith.constant 0 : i32
    %c0_i32_0 = arith.constant 0 : i32
    return %arg0, %c0_i32 : i32, i32
  }
  func.func @transform_1(%arg0: i32) -> (i32, i32) {
    %c0_i32 = arith.constant 0 : i32
    %c0_i32_0 = arith.constant 0 : i32
    %c0_i32_1 = arith.constant 0 : i32
    return %c0_i32, %c0_i32_0 : i32, i32
  }
  func.func @transform_2(%arg0: i32) -> (i32, i32) {
    %c0_i32 = arith.constant 0 : i32
    %c0_i32_0 = arith.constant 0 : i32
    %c0_i32_1 = arith.constant 0 : i32
    return %c0_i32, %c0_i32_0 : i32, i32
  }
  func.func @transform_3(%arg0: i32) -> (i32, i32) {
    %c0_i32 = arith.constant 0 : i32
    %c0_i32_0 = arith.constant 0 : i32
    return %arg0, %c0_i32 : i32, i32
  }
}

</mosaic_0001>

<bundles_post_ra>
// kernel: tpu_custom_call.1
= control target key start
LH: loop header
LB: loop body
LE: loop exit
PB: predicated region body
PF: predicated region fallthrough
CT: control target
= control target key end

     0   :  { %8 = vsyncpa [#allocation3], 0  ;;  %s243_s0 = inlined_call_operand.hbm [shape: f32[2,128], index: 0, kind: input, shape index: {}]   ;;  %s244_s1 = inlined_call_operand.hbm [shape: f32[128,128], index: 1, kind: input, shape index: {}]   ;;  %s245_s2 = inlined_call_operand.vmem [shape: f32[1,128], index: 2, kind: input, shape index: {}]   ;;  %s246_s3 = inlined_call_operand.hbm [shape: f32[2,128], index: 3, kind: output, shape index: {}]  }
   0x1   :  { %9 = vsyncpa [#allocation6], 0 }
   0x2   :  { %10 = vsyncpa [#allocation4], 0  ;;  %s16_s14 = sshll.u32 %s243_s0, 4  ;;  %s206_s15 = smov [#allocation2]   ;;  %s17_s14 = int_to_ptr.hbm [resolvable:$true] %s16_s14 }
   0x3   :  { %s18_s16 = sshll.u32 %s206_s15, 4  ;;  %s26_s19 = sshll.u32 %s244_s1, 4  ;;  %s19_s16 = int_to_ptr.vmem [resolvable:$true] %s18_s16  ;;  %s27_s19 = int_to_ptr.hbm [resolvable:$true] %s26_s19 }
   0x4   :  { %21 = dma.hbm_to_vmem [thread:$0]  %s17_s14, 32, %s19_s16, [#allocation3]  }
   0x5   :  { %s207_s20 = smov [#allocation5]   ;;  %s208_s22 = smov 128  }
   0x6   :  { %s28_s21 = sshll.u32 %s207_s20, 4  ;;  %s209_s23 = smov 8   ;;  %s29_s21 = int_to_ptr.vmem [resolvable:$true] %s28_s21 }
   0x7   :  { %34 = dma.hbm_to_vmem [thread:$0]  %s27_s19, 2048, %s29_s21, [#allocation6], %s208_s22, %s208_s22, %s209_s23  }
   0x8   :  { %200 = dma.done.wait [#allocation3], 32  }
   0x9   :  { %201 = vsyncadd [#allocation3], 4294967264 }
   0xa   :  { %202 = dma.done.wait [#allocation6], 2048  }
   0xb   :  { %203 = vsyncadd [#allocation6], 4294965248  ;;  %v61_v0 = vld [vmem:[#allocation5 + $0x78] sm:$0xff]  ;;  %v60_v1 = vld [vmem:[#allocation5 + $0x70] sm:$0xff]  ;;  %vm86_vm0 = vcmask 1041408   ;;  %s210_s24 = smov [#allocation7]  }
   0xc   :  { %66 = vmatpush.msra.mxu0 %v61_v0  ;;  %v59_v2 = vld [vmem:[#allocation5 + $0x68] sm:$0xff]  ;;  %v58_v3 = vld [vmem:[#allocation5 + $0x60] sm:$0xff]  ;;  %v57_v4 = vld [vmem:[#allocation5 + $0x58] sm:$0xff]  ;;  %s105_s25 = sshll.u32 %s210_s24, 4  ;;  %s106_s25 = int_to_ptr.vmem [resolvable:$true] %s105_s25 }
   0xd   :  { %v56_v5 = vld [vmem:[#allocation5 + $0x50] sm:$0xff]  ;;  %v55_v6 = vld [vmem:[#allocation5 + $0x48] sm:$0xff]  ;;  %v54_v7 = vld [vmem:[#allocation5 + $0x40] sm:$0xff] }
   0xe   :  { %67 = vmatpush.msra.mxu0 %v60_v1  ;;  %v53_v8 = vld [vmem:[#allocation5 + $0x38] sm:$0xff]  ;;  %v52_v9 = vld [vmem:[#allocation5 + $0x30] sm:$0xff]  ;;  %v51_v10 = vld [vmem:[#allocation5 + $0x28] sm:$0xff] }
   0xf   :  { %v50_v11 = vld [vmem:[#allocation5 + $0x20] sm:$0xff]  ;;  %v49_v12 = vld [vmem:[#allocation5 + $0x18] sm:$0xff]  ;;  %v48_v13 = vld [vmem:[#allocation5 + $0x10] sm:$0xff] }
  0x10   :  { %68 = vmatpush.msra.mxu0 %v59_v2  ;;  %v47_v14 = vld [vmem:[#allocation5 + $0x8] sm:$0xff]  ;;  %v46_v15 = vld [vmem:[#allocation5] sm:$0xff]  ;;  %v45_v16 = vld [vmem:[#allocation2] sm:$0x3] }
  0x11   :  { %v123_v17 = vld [vmem:[%s245_s2] ss:$0 sm:$0xff]  ;;  %s107_s2 = sshll.u32 %s246_s3, 4  ;;  %s108_s2 = int_to_ptr.hbm [resolvable:$true] %s107_s2 }
  0x12   :  { %69 = vmatpush.msra.mxu0 %v58_v3 }
  0x14   :  { %70 = vmatpush.msra.mxu0 %v57_v4 }
  0x16   :  { %71 = vmatpush.msra.mxu0 %v56_v5 }
  0x18   :  { %72 = vmatpush.msra.mxu0 %v55_v6 }
  0x1a   :  { %73 = vmatpush.msra.mxu0 %v54_v7 }
  0x1c   :  { %74 = vmatpush.msra.mxu0 %v53_v8 }
  0x1e   :  { %75 = vmatpush.msra.mxu0 %v52_v9 }
  0x20   :  { %76 = vmatpush.msra.mxu0 %v51_v10 }
  0x22   :  { %77 = vmatpush.msra.mxu0 %v50_v11 }
  0x24   :  { %78 = vmatpush.msra.mxu0 %v49_v12 }
  0x26   :  { %79 = vmatpush.msra.mxu0 %v48_v13 }
  0x28   :  { %80 = vmatpush.msra.mxu0 %v47_v14 }
  0x2a   :  { %81 = vmatpush.msra.mxu0 %v46_v15 }
  0x2b   :  { %82 = vmatmul.f32.vlgmr.msra.gmra.mxu0 %v45_v16 }
  0xa8   :  { %v83_v18 = vpop.f32.mrf.mxu0 }
  0xa9   :  { %v84_v19 = vadd.f32 %v123_v17, %v83_v18 }
  0xab   :  { %v87_v20 = vsel %vm86_vm0, %v84_v19, -inf }
  0xac   :  { %88 = vmax.xlane.f32.xlu0 %v87_v20 }
 0x11f   :  { %v89_v21 = vpop.xlane.xlu0 %88 }
 0x120   :  { %v90_v22 = vsub.f32 %v84_v19, %v89_v21 }
 0x122   :  { %v91_v23 = vmul.f32 1.442695, %v90_v22 }
 0x124   :  { %124 = vpow2.f32 %v91_v23 }
 0x12a   :  { %v125_v24 = vpop.eup %124 }
 0x12b   :  { %v93_v25 = vsel %vm86_vm0, %v125_v24, 0.0 }
 0x12c   :  { %94 = vadd.xlane.f32.xlu0 %v93_v25 }
 0x19f   :  { %v95_v26 = vpop.xlane.xlu0 %94 }
 0x1a0   :  { %126 = vlog2.f32 %v95_v26 }
 0x1a6   :  { %v127_v27 = vpop.eup %126 }
 0x1a7   :  { %v97_v28 = vmul.f32 0.6931472, %v127_v27 }
 0x1a9   :  { %v98_v29 = vsub.f32 %v90_v22, %v97_v28 }
 0x1ab   :  { %99 = vst [vmem:[#allocation7] sm:$0x3] %v98_v29 }
 0x1ac   :  { %110 = dma.vmem_to_hbm [thread:$0]  %s106_s25, 32, %s108_s2, [#allocation4]  }
 0x1ad   :  { %204 = dma.done.wait [#allocation4], 32  }
 0x1ae   :  { %205 = vsyncadd [#allocation4], 4294967264 }
 0x1af   :  { %115 = vsyncpa [#allocation3], 1 }
 0x1b0   :  { %116 = vsyncpa [#allocation6], 1 }
 0x1b1   :  { %117 = vsyncpa [#allocation4], 1 }

</bundles_post_ra>
